<compile_context>
chip_gen: v6e
topology: v6e:2x2x1
jax: 0.10.0
libtpu: 0.0.40
codegen_flags: <defaults>
</compile_context>

<pallas_src>
import jax
import jax.numpy as jnp
from jax import lax
from jax.experimental import pallas as pl
from jax.experimental.pallas import tpu as pltpu

_RTOL = 1e-5   # torch.allclose defaults
_ATOL = 1e-8


# ---------------------------------------------------------------------------
# kernel 1: M[i, k] = sum_j connection[i, j, k] * d[j]     (d = y - x)
#   d_ref : (1, D)            lane-dense row
#   g_ref : (ti*D, D) block   rows = (i, j) pairs of the reshaped connection
#   m_ref : (ti, D) block     rows i of M
# ---------------------------------------------------------------------------
def _make_m_kernel(ti: int, d_dim: int):
    def kernel(d_ref, g_ref, m_ref):
        d = d_ref[...]                                    # (1, D)
        # ti is small (a few to a few dozen rows); a static slab loop keeps
        # every slice static and each (D, D) slab feeds one MXU matvec.
        for ii in range(ti):
            g_i = g_ref[pl.ds(ii * d_dim, d_dim), :]      # (D, D) = G[i, :, :]
            m_ref[pl.ds(ii, 1), :] = jnp.dot(
                d, g_i, preferred_element_type=jnp.float32)

    return kernel


# ---------------------------------------------------------------------------
# kernel 2: epilogue -- allclose gating + the two Schild matvecs (all O(D^2)).
#   m_ref : (D, D)   M[i, k]
#   v/x/y : (1, D)   lane-dense rows
# ---------------------------------------------------------------------------
def _schild_finish_kernel(m_ref, v_ref, x_ref, y_ref, o_ref):
    v = v_ref[...]
    x = x_ref[...]
    y = y_ref[...]

    xy_close = jnp.max(jnp.abs(x - y) - (_ATOL + _RTOL * jnp.abs(y))) <= 0.0
    v_zero = jnp.max(jnp.abs(v)) <= _ATOL

    mT = m_ref[...].T                                     # MT[k, i] = M[i, k]
    # v_m    = v   - 0.5  * einsum(G, y-x, v)   = v   - 0.5  * M @ v
    # result = v_m - 0.5  * einsum(G, y-m, v_m) = v_m - 0.25 * M @ v_m
    mv = jnp.dot(v, mT, preferred_element_type=jnp.float32)       # (1, D)
    v_m = v - 0.5 * mv
    mvm = jnp.dot(v_m, mT, preferred_element_type=jnp.float32)    # (1, D)
    res = v_m - 0.25 * mvm

    out = jnp.where(v_zero, jnp.zeros_like(v), res)
    out = jnp.where(xy_close, v, out)
    o_ref[...] = out.astype(o_ref.dtype)


# ---------------------------------------------------------------------------
# pole ladder kernel (lane-dense rows, rsqrt on the EUP, multiplies not divides)
# ---------------------------------------------------------------------------
def _pole_kernel(v_ref, x_ref, y_ref, o_ref):
    v = v_ref[...]
    x = x_ref[...]
    y = y_ref[...]

    xy_close = jnp.max(jnp.abs(x - y) - (_ATOL + _RTOL * jnp.abs(y))) <= 0.0
    v_zero = jnp.max(jnp.abs(v)) <= _ATOL

    m = 0.5 * (x + y)
    sv = jnp.sum(v * v, keepdims=True)                    # (1, 1)
    v_norm = jnp.sqrt(sv)
    v_hat = v * (1.0 / (v_norm + 1e-8))
    p = m + v_hat
    v1 = 2.0 * (p - x)
    v2 = 2.0 * (y - p)
    result = v2 - v1
    sr = jnp.sum(result * result, keepdims=True)          # (1, 1)
    # ||v|| / max(||result||, 1e-8)  ==  ||v|| * rsqrt(max(||result||^2, 1e-16))
    scale = v_norm * lax.rsqrt(jnp.maximum(sr, 1e-16))
    result = result * scale

    out = jnp.where(v_zero, jnp.zeros_like(v), result)
    out = jnp.where(xy_close, v, out)
    o_ref[...] = out.astype(o_ref.dtype)


# ---------------------------------------------------------------------------
# wrapper
# ---------------------------------------------------------------------------
def _pick_i_tile(d_dim: int, max_tile_bytes: int) -> int:
    """Largest i-tile such that the streamed connection block (ti*D*D*4 bytes)
    stays under max_tile_bytes, with ti a divisor of D and a multiple of 8
    (or ti == D) to satisfy the (8, 128) block constraint."""
    row_bytes = d_dim * d_dim * 4
    valid = [t for t in range(1, d_dim + 1)
             if d_dim % t == 0 and (t % 8 == 0 or t == d_dim)]
    fitting = [t for t in valid if t * row_bytes <= max_tile_bytes]
    return max(fitting) if fitting else min(valid)


def parallel_transport(v, x, y, connection=None, *, method="schild",
                       max_tile_bytes=2 * 1024 * 1024):
    """JAX/Pallas equivalent of ParallelTransport.forward(v, x, y, connection)."""
    assert v.shape == x.shape == y.shape and v.ndim == 1
    d_dim = v.shape[0]
    f32 = jnp.float32

    vr = v.reshape(1, d_dim).astype(f32)
    xr = x.reshape(1, d_dim).astype(f32)
    yr = y.reshape(1, d_dim).astype(f32)

    if method == "pole":
        out = pl.pallas_call(
            _pole_kernel,
            out_shape=jax.ShapeDtypeStruct((1, d_dim), f32),
        )(vr, xr, yr)
        return out.reshape(d_dim).astype(v.dtype)

    # ---------------- schild ----------------
    if connection is None:
        # Identity transport modulo the allclose guards: no kernel launch and
        # no (D, D, D) zero tensor is ever materialized.
        xy_close = jnp.all(jnp.abs(xr - yr) <= _ATOL + _RTOL * jnp.abs(yr))
        v_zero = jnp.all(jnp.abs(vr) <= _ATOL)
        keep_zero = jnp.logical_and(jnp.logical_not(xy_close), v_zero)
        return jnp.where(keep_zero, jnp.zeros_like(v), v)

    g = connection.astype(f32)
    assert g.shape == (d_dim, d_dim, d_dim)
    g_rows = g.reshape(d_dim * d_dim, d_dim)       # free reshape: row = i*D + j
    d_row = yr - xr                                # (1, D)

    ti = _pick_i_tile(d_dim, max_tile_bytes)
    nt = d_dim // ti
    m_kernel = _make_m_kernel(ti, d_dim)

    cost = pl.CostEstimate(
        flops=2 * d_dim ** 3,
        transcendentals=0,
        bytes_accessed=4 * (d_dim ** 3 + d_dim * d_dim + 2 * d_dim),
    )

    if nt == 1:
        # Whole connection fits in one comfortable VMEM block: single-block
        # call, no grid bookkeeping.
        m = pl.pallas_call(
            m_kernel,
            out_shape=jax.ShapeDtypeStruct((d_dim, d_dim), f32),
            cost_estimate=cost,
        )(d_row, g_rows)
    else:
        # Stream the connection in i-tiles: each grid step DMAs one
        # (ti*D, D) slab (<= ~max_tile_bytes) and writes ti rows of M, so G
        # never has to be VMEM-resident and the DMA overlaps the MXU work.
        tile_bytes = ti * d_dim * d_dim * 4
        vmem_need = (2 * tile_bytes + 2 * ti * d_dim * 4
                     + 2 * d_dim * 4 + (1 << 20))
        vmem_limit = vmem_need if vmem_need > (16 << 20) else None
        m = pl.pallas_call(
            m_kernel,
            out_shape=jax.ShapeDtypeStruct((d_dim, d_dim), f32),
            grid=(nt,),
            in_specs=[pl.BlockSpec((1, d_dim), lambda t: (0, 0)),
                      pl.BlockSpec((ti * d_dim, d_dim), lambda t: (t, 0))],
            out_specs=pl.BlockSpec((ti, d_dim), lambda t: (t, 0)),
            compiler_params=pltpu.CompilerParams(
                dimension_semantics=("parallel",),
                vmem_limit_bytes=vmem_limit,
            ),
            cost_estimate=cost,
        )(d_row, g_rows)

    out = pl.pallas_call(
        _schild_finish_kernel,
        out_shape=jax.ShapeDtypeStruct((1, d_dim), f32),
    )(m, vr, xr, yr)
    return out.reshape(d_dim).astype(v.dtype)


# ------------------------- pure-JAX references -------------------------
def _schild_ref(v, x, y, g):
    if bool(jnp.allclose(x, y)):
        return v
    if bool(jnp.allclose(v, jnp.zeros_like(v))):
        return jnp.zeros_like(v)
    if g is None:
        return v
    hi = lax.Precision.HIGHEST
    m = 0.5 * (x + y)
    v_m = v - 0.5 * jnp.einsum("ijk,j,k->i", g, y - x, v, precision=hi)
    return v_m - 0.5 * jnp.einsum("ijk,j,k->i", g, y - m, v_m, precision=hi)


def _pole_ref(v, x, y):
    if bool(jnp.allclose(x, y)):
        return v
    if bool(jnp.allclose(v, jnp.zeros_like(v))):
        return jnp.zeros_like(v)
    m = 0.5 * (x + y)
    v_norm = jnp.linalg.norm(v, axis=-1, keepdims=True)
    v_normalized = v / (v_norm + 1e-8)
    p = m + v_normalized
    v1 = 2.0 * (p - x)
    v2 = 2.0 * (y - p)
    result = v2 - v1
    return result * (jnp.linalg.norm(v) /
                     jnp.maximum(jnp.linalg.norm(result), 1e-8))


if __name__ == "__main__":
    import numpy as np

    dim = 32
    key = jax.random.PRNGKey(0)
    k1, k2, k3, k4 = jax.random.split(key, 4)
    v = jax.random.normal(k1, (dim,), jnp.float32)
    x = jax.random.normal(k2, (dim,), jnp.float32)
    y = jax.random.normal(k3, (dim,), jnp.float32)
    connection = 0.05 * jax.random.normal(k4, (dim, dim, dim), jnp.float32)

    # schild, single-block path (whole connection in one VMEM block)
    out_schild = parallel_transport(v, x, y, connection, method="schild")
    # schild, tiled/pipelined path (force small tiles -> grid over i)
    out_schild_tiled = parallel_transport(v, x, y, connection, method="schild",
                                          max_tile_bytes=32 * 1024)
    # schild without a connection (pure-JAX fast path, no kernel)
    out_schild_nog = parallel_transport(v, x, y, None, method="schild")
    # pole ladder
    out_pole = parallel_transport(v, x, y, method="pole")
    # guard paths: x ~= y  and  v == 0
    out_same = parallel_transport(v, x, x + 1e-9, connection, method="schild")
    out_vzero = parallel_transport(jnp.zeros_like(v), x, y, connection,
                                   method="schild")
    jax.block_until_ready((out_schild, out_schild_tiled, out_schild_nog,
                           out_pole, out_same, out_vzero))

    ref_schild = _schild_ref(v, x, y, connection)
    ref_pole = _pole_ref(v, x, y)

    np.testing.assert_allclose(np.asarray(out_schild), np.asarray(ref_schild),
                               rtol=1e-4, atol=1e-4)
    np.testing.assert_allclose(np.asarray(out_schild_tiled),
                               np.asarray(ref_schild), rtol=1e-4, atol=1e-4)
    np.testing.assert_allclose(np.asarray(out_schild_nog), np.asarray(v),
                               rtol=0, atol=0)
    np.testing.assert_allclose(np.asarray(out_pole), np.asarray(ref_pole),
                               rtol=1e-4, atol=1e-4)
    np.testing.assert_allclose(np.asarray(out_same), np.asarray(v),
                               rtol=0, atol=0)
    np.testing.assert_allclose(np.asarray(out_vzero),
                               np.zeros((dim,), np.float32), rtol=0, atol=0)
    print("KERNEL_OK")
</pallas_src>

<mosaic_0001>
module attributes {stable_mosaic.version = 11 : i64} {
  func.func @kernel(%arg0: memref<1x32xf32, #tpu.memory_space<vmem>>, %arg1: memref<1024x32xf32, #tpu.memory_space<vmem>>, %arg2: memref<32x32xf32, #tpu.memory_space<vmem>>) attributes {dimension_semantics = [], scalar_prefetch = 0 : i64, scratch_operands = 0 : i64, tpu.core_type = #tpu.core_type<tc>} {
    %c0 = arith.constant 0 : index
    %c0_0 = arith.constant 0 : index
    %0 = vector.load %arg0[%c0, %c0_0] : memref<1x32xf32, #tpu.memory_space<vmem>>, vector<1x32xf32>
    %c0_1 = arith.constant 0 : index
    %c0_2 = arith.constant 0 : index
    %1 = vector.load %arg1[%c0_1, %c0_2] : memref<1024x32xf32, #tpu.memory_space<vmem>>, vector<32x32xf32>
    %cst = arith.constant dense<0.000000e+00> : vector<1x32xf32>
    %2 = tpu.matmul %0, %1, %cst {dimension_numbers = #tpu.dot_dimension_numbers<[1], [0], [0], [1], [0, 0, 1, 1], [], []>} : vector<1x32xf32>, vector<32x32xf32>, vector<1x32xf32> -> vector<1x32xf32>
    %c0_3 = arith.constant 0 : index
    %c0_4 = arith.constant 0 : index
    %3 = vector.load %arg2[%c0_3, %c0_4] : memref<32x32xf32, #tpu.memory_space<vmem>>, vector<1x32xf32>
    tpu.vector_store %arg2[%c0_3, %c0_4], %2 {strides = array<i32>} : memref<32x32xf32, #tpu.memory_space<vmem>>, vector<1x32xf32>,
    %c32 = arith.constant 32 : index
    %c0_5 = arith.constant 0 : index
    %4 = vector.load %arg1[%c32, %c0_5] : memref<1024x32xf32, #tpu.memory_space<vmem>>, vector<32x32xf32>
    %cst_6 = arith.constant dense<0.000000e+00> : vector<1x32xf32>
    %5 = tpu.matmul %0, %4, %cst_6 {dimension_numbers = #tpu.dot_dimension_numbers<[1], [0], [0], [1], [0, 0, 1, 1], [], []>} : vector<1x32xf32>, vector<32x32xf32>, vector<1x32xf32> -> vector<1x32xf32>
    %c1 = arith.constant 1 : index
    %c0_7 = arith.constant 0 : index
    %6 = vector.load %arg2[%c1, %c0_7] : memref<32x32xf32, #tpu.memory_space<vmem>>, vector<1x32xf32>
    tpu.vector_store %arg2[%c1, %c0_7], %5 {strides = array<i32>} : memref<32x32xf32, #tpu.memory_space<vmem>>, vector<1x32xf32>,
    %c64 = arith.constant 64 : index
    %c0_8 = arith.constant 0 : index
    %7 = vector.load %arg1[%c64, %c0_8] : memref<1024x32xf32, #tpu.memory_space<vmem>>, vector<32x32xf32>
    %cst_9 = arith.constant dense<0.000000e+00> : vector<1x32xf32>
    %8 = tpu.matmul %0, %7, %cst_9 {dimension_numbers = #tpu.dot_dimension_numbers<[1], [0], [0], [1], [0, 0, 1, 1], [], []>} : vector<1x32xf32>, vector<32x32xf32>, vector<1x32xf32> -> vector<1x32xf32>
    %c2 = arith.constant 2 : index
    %c0_10 = arith.constant 0 : index
    %9 = vector.load %arg2[%c2, %c0_10] : memref<32x32xf32, #tpu.memory_space<vmem>>, vector<1x32xf32>
    tpu.vector_store %arg2[%c2, %c0_10], %8 {strides = array<i32>} : memref<32x32xf32, #tpu.memory_space<vmem>>, vector<1x32xf32>,
    %c96 = arith.constant 96 : index
    %c0_11 = arith.constant 0 : index
    %10 = vector.load %arg1[%c96, %c0_11] : memref<1024x32xf32, #tpu.memory_space<vmem>>, vector<32x32xf32>
    %cst_12 = arith.constant dense<0.000000e+00> : vector<1x32xf32>
    %11 = tpu.matmul %0, %10, %cst_12 {dimension_numbers = #tpu.dot_dimension_numbers<[1], [0], [0], [1], [0, 0, 1, 1], [], []>} : vector<1x32xf32>, vector<32x32xf32>, vector<1x32xf32> -> vector<1x32xf32>
    %c3 = arith.constant 3 : index
    %c0_13 = arith.constant 0 : index
    %12 = vector.load %arg2[%c3, %c0_13] : memref<32x32xf32, #tpu.memory_space<vmem>>, vector<1x32xf32>
    tpu.vector_store %arg2[%c3, %c0_13], %11 {strides = array<i32>} : memref<32x32xf32, #tpu.memory_space<vmem>>, vector<1x32xf32>,
    %c128 = arith.constant 128 : index
    %c0_14 = arith.constant 0 : index
    %13 = vector.load %arg1[%c128, %c0_14] : memref<1024x32xf32, #tpu.memory_space<vmem>>, vector<32x32xf32>
    %cst_15 = arith.constant dense<0.000000e+00> : vector<1x32xf32>
    %14 = tpu.matmul %0, %13, %cst_15 {dimension_numbers = #tpu.dot_dimension_numbers<[1], [0], [0], [1], [0, 0, 1, 1], [], []>} : vector<1x32xf32>, vector<32x32xf32>, vector<1x32xf32> -> vector<1x32xf32>
    %c4 = arith.constant 4 : index
    %c0_16 = arith.constant 0 : index
    %15 = vector.load %arg2[%c4, %c0_16] : memref<32x32xf32, #tpu.memory_space<vmem>>, vector<1x32xf32>
    tpu.vector_store %arg2[%c4, %c0_16], %14 {strides = array<i32>} : memref<32x32xf32, #tpu.memory_space<vmem>>, vector<1x32xf32>,
    %c160 = arith.constant 160 : index
    %c0_17 = arith.constant 0 : index
    %16 = vector.load %arg1[%c160, %c0_17] : memref<1024x32xf32, #tpu.memory_space<vmem>>, vector<32x32xf32>
    %cst_18 = arith.constant dense<0.000000e+00> : vector<1x32xf32>
    %17 = tpu.matmul %0, %16, %cst_18 {dimension_numbers = #tpu.dot_dimension_numbers<[1], [0], [0], [1], [0, 0, 1, 1], [], []>} : vector<1x32xf32>, vector<32x32xf32>, vector<1x32xf32> -> vector<1x32xf32>
    %c5 = arith.constant 5 : index
    %c0_19 = arith.constant 0 : index
    %18 = vector.load %arg2[%c5, %c0_19] : memref<32x32xf32, #tpu.memory_space<vmem>>, vector<1x32xf32>
    tpu.vector_store %arg2[%c5, %c0_19], %17 {strides = array<i32>} : memref<32x32xf32, #tpu.memory_space<vmem>>, vector<1x32xf32>,
    %c192 = arith.constant 192 : index
    %c0_20 = arith.constant 0 : index
    %19 = vector.load %arg1[%c192, %c0_20] : memref<1024x32xf32, #tpu.memory_space<vmem>>, vector<32x32xf32>
    %cst_21 = arith.constant dense<0.000000e+00> : vector<1x32xf32>
    %20 = tpu.matmul %0, %19, %cst_21 {dimension_numbers = #tpu.dot_dimension_numbers<[1], [0], [0], [1], [0, 0, 1, 1], [], []>} : vector<1x32xf32>, vector<32x32xf32>, vector<1x32xf32> -> vector<1x32xf32>
    %c6 = arith.constant 6 : index
    %c0_22 = arith.constant 0 : index
    %21 = vector.load %arg2[%c6, %c0_22] : memref<32x32xf32, #tpu.memory_space<vmem>>, vector<1x32xf32>
    tpu.vector_store %arg2[%c6, %c0_22], %20 {strides = array<i32>} : memref<32x32xf32, #tpu.memory_space<vmem>>, vector<1x32xf32>,
    %c224 = arith.constant 224 : index
    %c0_23 = arith.constant 0 : index
    %22 = vector.load %arg1[%c224, %c0_23] : memref<1024x32xf32, #tpu.memory_space<vmem>>, vector<32x32xf32>
    %cst_24 = arith.constant dense<0.000000e+00> : vector<1x32xf32>
    %23 = tpu.matmul %0, %22, %cst_24 {dimension_numbers = #tpu.dot_dimension_numbers<[1], [0], [0], [1], [0, 0, 1, 1], [], []>} : vector<1x32xf32>, vector<32x32xf32>, vector<1x32xf32> -> vector<1x32xf32>
    %c7 = arith.constant 7 : index
    %c0_25 = arith.constant 0 : index
    %24 = vector.load %arg2[%c7, %c0_25] : memref<32x32xf32, #tpu.memory_space<vmem>>, vector<1x32xf32>
    tpu.vector_store %arg2[%c7, %c0_25], %23 {strides = array<i32>} : memref<32x32xf32, #tpu.memory_space<vmem>>, vector<1x32xf32>,
    %c256 = arith.constant 256 : index
    %c0_26 = arith.constant 0 : index
    %25 = vector.load %arg1[%c256, %c0_26] : memref<1024x32xf32, #tpu.memory_space<vmem>>, vector<32x32xf32>
    %cst_27 = arith.constant dense<0.000000e+00> : vector<1x32xf32>
    %26 = tpu.matmul %0, %25, %cst_27 {dimension_numbers = #tpu.dot_dimension_numbers<[1], [0], [0], [1], [0, 0, 1, 1], [], []>} : vector<1x32xf32>, vector<32x32xf32>, vector<1x32xf32> -> vector<1x32xf32>
    %c8 = arith.constant 8 : index
    %c0_28 = arith.constant 0 : index
    %27 = vector.load %arg2[%c8, %c0_28] : memref<32x32xf32, #tpu.memory_space<vmem>>, vector<1x32xf32>
    tpu.vector_store %arg2[%c8, %c0_28], %26 {strides = array<i32>} : memref<32x32xf32, #tpu.memory_space<vmem>>, vector<1x32xf32>,
    %c288 = arith.constant 288 : index
    %c0_29 = arith.constant 0 : index
    %28 = vector.load %arg1[%c288, %c0_29] : memref<1024x32xf32, #tpu.memory_space<vmem>>, vector<32x32xf32>
    %cst_30 = arith.constant dense<0.000000e+00> : vector<1x32xf32>
    %29 = tpu.matmul %0, %28, %cst_30 {dimension_numbers = #tpu.dot_dimension_numbers<[1], [0], [0], [1], [0, 0, 1, 1], [], []>} : vector<1x32xf32>, vector<32x32xf32>, vector<1x32xf32> -> vector<1x32xf32>
    %c9 = arith.constant 9 : index
    %c0_31 = arith.constant 0 : index
    %30 = vector.load %arg2[%c9, %c0_31] : memref<32x32xf32, #tpu.memory_space<vmem>>, vector<1x32xf32>
    tpu.vector_store %arg2[%c9, %c0_31], %29 {strides = array<i32>} : memref<32x32xf32, #tpu.memory_space<vmem>>, vector<1x32xf32>,
    %c320 = arith.constant 320 : index
    %c0_32 = arith.constant 0 : index
    %31 = vector.load %arg1[%c320, %c0_32] : memref<1024x32xf32, #tpu.memory_space<vmem>>, vector<32x32xf32>
    %cst_33 = arith.constant dense<0.000000e+00> : vector<1x32xf32>
    %32 = tpu.matmul %0, %31, %cst_33 {dimension_numbers = #tpu.dot_dimension_numbers<[1], [0], [0], [1], [0, 0, 1, 1], [], []>} : vector<1x32xf32>, vector<32x32xf32>, vector<1x32xf32> -> vector<1x32xf32>
    %c10 = arith.constant 10 : index
    %c0_34 = arith.constant 0 : index
    %33 = vector.load %arg2[%c10, %c0_34] : memref<32x32xf32, #tpu.memory_space<vmem>>, vector<1x32xf32>
    tpu.vector_store %arg2[%c10, %c0_34], %32 {strides = array<i32>} : memref<32x32xf32, #tpu.memory_space<vmem>>, vector<1x32xf32>,
    %c352 = arith.constant 352 : index
    %c0_35 = arith.constant 0 : index
    %34 = vector.load %arg1[%c352, %c0_35] : memref<1024x32xf32, #tpu.memory_space<vmem>>, vector<32x32xf32>
    %cst_36 = arith.constant dense<0.000000e+00> : vector<1x32xf32>
    %35 = tpu.matmul %0, %34, %cst_36 {dimension_numbers = #tpu.dot_dimension_numbers<[1], [0], [0], [1], [0, 0, 1, 1], [], []>} : vector<1x32xf32>, vector<32x32xf32>, vector<1x32xf32> -> vector<1x32xf32>
    %c11 = arith.constant 11 : index
    %c0_37 = arith.constant 0 : index
    %36 = vector.load %arg2[%c11, %c0_37] : memref<32x32xf32, #tpu.memory_space<vmem>>, vector<1x32xf32>
    tpu.vector_store %arg2[%c11, %c0_37], %35 {strides = array<i32>} : memref<32x32xf32, #tpu.memory_space<vmem>>, vector<1x32xf32>,
    %c384 = arith.constant 384 : index
    %c0_38 = arith.constant 0 : index
    %37 = vector.load %arg1[%c384, %c0_38] : memref<1024x32xf32, #tpu.memory_space<vmem>>, vector<32x32xf32>
    %cst_39 = arith.constant dense<0.000000e+00> : vector<1x32xf32>
    %38 = tpu.matmul %0, %37, %cst_39 {dimension_numbers = #tpu.dot_dimension_numbers<[1], [0], [0], [1], [0, 0, 1, 1], [], []>} : vector<1x32xf32>, vector<32x32xf32>, vector<1x32xf32> -> vector<1x32xf32>
    %c12 = arith.constant 12 : index
    %c0_40 = arith.constant 0 : index
    %39 = vector.load %arg2[%c12, %c0_40] : memref<32x32xf32, #tpu.memory_space<vmem>>, vector<1x32xf32>
    tpu.vector_store %arg2[%c12, %c0_40], %38 {strides = array<i32>} : memref<32x32xf32, #tpu.memory_space<vmem>>, vector<1x32xf32>,
    %c416 = arith.constant 416 : index
    %c0_41 = arith.constant 0 : index
    %40 = vector.load %arg1[%c416, %c0_41] : memref<1024x32xf32, #tpu.memory_space<vmem>>, vector<32x32xf32>
    %cst_42 = arith.constant dense<0.000000e+00> : vector<1x32xf32>
    %41 = tpu.matmul %0, %40, %cst_42 {dimension_numbers = #tpu.dot_dimension_numbers<[1], [0], [0], [1], [0, 0, 1, 1], [], []>} : vector<1x32xf32>, vector<32x32xf32>, vector<1x32xf32> -> vector<1x32xf32>
    %c13 = arith.constant 13 : index
    %c0_43 = arith.constant 0 : index
    %42 = vector.load %arg2[%c13, %c0_43] : memref<32x32xf32, #tpu.memory_space<vmem>>, vector<1x32xf32>
    tpu.vector_store %arg2[%c13, %c0_43], %41 {strides = array<i32>} : memref<32x32xf32, #tpu.memory_space<vmem>>, vector<1x32xf32>,
    %c448 = arith.constant 448 : index
    %c0_44 = arith.constant 0 : index
    %43 = vector.load %arg1[%c448, %c0_44] : memref<1024x32xf32, #tpu.memory_space<vmem>>, vector<32x32xf32>
    %cst_45 = arith.constant dense<0.000000e+00> : vector<1x32xf32>
    %44 = tpu.matmul %0, %43, %cst_45 {dimension_numbers = #tpu.dot_dimension_numbers<[1], [0], [0], [1], [0, 0, 1, 1], [], []>} : vector<1x32xf32>, vector<32x32xf32>, vector<1x32xf32> -> vector<1x32xf32>
    %c14 = arith.constant 14 : index
    %c0_46 = arith.constant 0 : index
    %45 = vector.load %arg2[%c14, %c0_46] : memref<32x32xf32, #tpu.memory_space<vmem>>, vector<1x32xf32>
    tpu.vector_store %arg2[%c14, %c0_46], %44 {strides = array<i32>} : memref<32x32xf32, #tpu.memory_space<vmem>>, vector<1x32xf32>,
    %c480 = arith.constant 480 : index
    %c0_47 = arith.constant 0 : index
    %46 = vector.load %arg1[%c480, %c0_47] : memref<1024x32xf32, #tpu.memory_space<vmem>>, vector<32x32xf32>
    %cst_48 = arith.constant dense<0.000000e+00> : vector<1x32xf32>
    %47 = tpu.matmul %0, %46, %cst_48 {dimension_numbers = #tpu.dot_dimension_numbers<[1], [0], [0], [1], [0, 0, 1, 1], [], []>} : vector<1x32xf32>, vector<32x32xf32>, vector<1x32xf32> -> vector<1x32xf32>
    %c15 = arith.constant 15 : index
    %c0_49 = arith.constant 0 : index
    %48 = vector.load %arg2[%c15, %c0_49] : memref<32x32xf32, #tpu.memory_space<vmem>>, vector<1x32xf32>
    tpu.vector_store %arg2[%c15, %c0_49], %47 {strides = array<i32>} : memref<32x32xf32, #tpu.memory_space<vmem>>, vector<1x32xf32>,
    %c512 = arith.constant 512 : index
    %c0_50 = arith.constant 0 : index
    %49 = vector.load %arg1[%c512, %c0_50] : memref<1024x32xf32, #tpu.memory_space<vmem>>, vector<32x32xf32>
    %cst_51 = arith.constant dense<0.000000e+00> : vector<1x32xf32>
    %50 = tpu.matmul %0, %49, %cst_51 {dimension_numbers = #tpu.dot_dimension_numbers<[1], [0], [0], [1], [0, 0, 1, 1], [], []>} : vector<1x32xf32>, vector<32x32xf32>, vector<1x32xf32> -> vector<1x32xf32>
    %c16 = arith.constant 16 : index
    %c0_52 = arith.constant 0 : index
    %51 = vector.load %arg2[%c16, %c0_52] : memref<32x32xf32, #tpu.memory_space<vmem>>, vector<1x32xf32>
    tpu.vector_store %arg2[%c16, %c0_52], %50 {strides = array<i32>} : memref<32x32xf32, #tpu.memory_space<vmem>>, vector<1x32xf32>,
    %c544 = arith.constant 544 : index
    %c0_53 = arith.constant 0 : index
    %52 = vector.load %arg1[%c544, %c0_53] : memref<1024x32xf32, #tpu.memory_space<vmem>>, vector<32x32xf32>
    %cst_54 = arith.constant dense<0.000000e+00> : vector<1x32xf32>
    %53 = tpu.matmul %0, %52, %cst_54 {dimension_numbers = #tpu.dot_dimension_numbers<[1], [0], [0], [1], [0, 0, 1, 1], [], []>} : vector<1x32xf32>, vector<32x32xf32>, vector<1x32xf32> -> vector<1x32xf32>
    %c17 = arith.constant 17 : index
    %c0_55 = arith.constant 0 : index
    %54 = vector.load %arg2[%c17, %c0_55] : memref<32x32xf32, #tpu.memory_space<vmem>>, vector<1x32xf32>
    tpu.vector_store %arg2[%c17, %c0_55], %53 {strides = array<i32>} : memref<32x32xf32, #tpu.memory_space<vmem>>, vector<1x32xf32>,
    %c576 = arith.constant 576 : index
    %c0_56 = arith.constant 0 : index
    %55 = vector.load %arg1[%c576, %c0_56] : memref<1024x32xf32, #tpu.memory_space<vmem>>, vector<32x32xf32>
    %cst_57 = arith.constant dense<0.000000e+00> : vector<1x32xf32>
    %56 = tpu.matmul %0, %55, %cst_57 {dimension_numbers = #tpu.dot_dimension_numbers<[1], [0], [0], [1], [0, 0, 1, 1], [], []>} : vector<1x32xf32>, vector<32x32xf32>, vector<1x32xf32> -> vector<1x32xf32>
    %c18 = arith.constant 18 : index
    %c0_58 = arith.constant 0 : index
    %57 = vector.load %arg2[%c18, %c0_58] : memref<32x32xf32, #tpu.memory_space<vmem>>, vector<1x32xf32>
    tpu.vector_store %arg2[%c18, %c0_58], %56 {strides = array<i32>} : memref<32x32xf32, #tpu.memory_space<vmem>>, vector<1x32xf32>,
    %c608 = arith.constant 608 : index
    %c0_59 = arith.constant 0 : index
    %58 = vector.load %arg1[%c608, %c0_59] : memref<1024x32xf32, #tpu.memory_space<vmem>>, vector<32x32xf32>
    %cst_60 = arith.constant dense<0.000000e+00> : vector<1x32xf32>
    %59 = tpu.matmul %0, %58, %cst_60 {dimension_numbers = #tpu.dot_dimension_numbers<[1], [0], [0], [1], [0, 0, 1, 1], [], []>} : vector<1x32xf32>, vector<32x32xf32>, vector<1x32xf32> -> vector<1x32xf32>
    %c19 = arith.constant 19 : index
    %c0_61 = arith.constant 0 : index
    %60 = vector.load %arg2[%c19, %c0_61] : memref<32x32xf32, #tpu.memory_space<vmem>>, vector<1x32xf32>
    tpu.vector_store %arg2[%c19, %c0_61], %59 {strides = array<i32>} : memref<32x32xf32, #tpu.memory_space<vmem>>, vector<1x32xf32>,
    %c640 = arith.constant 640 : index
    %c0_62 = arith.constant 0 : index
    %61 = vector.load %arg1[%c640, %c0_62] : memref<1024x32xf32, #tpu.memory_space<vmem>>, vector<32x32xf32>
    %cst_63 = arith.constant dense<0.000000e+00> : vector<1x32xf32>
    %62 = tpu.matmul %0, %61, %cst_63 {dimension_numbers = #tpu.dot_dimension_numbers<[1], [0], [0], [1], [0, 0, 1, 1], [], []>} : vector<1x32xf32>, vector<32x32xf32>, vector<1x32xf32> -> vector<1x32xf32>
    %c20 = arith.constant 20 : index
    %c0_64 = arith.constant 0 : index
    %63 = vector.load %arg2[%c20, %c0_64] : memref<32x32xf32, #tpu.memory_space<vmem>>, vector<1x32xf32>
    tpu.vector_store %arg2[%c20, %c0_64], %62 {strides = array<i32>} : memref<32x32xf32, #tpu.memory_space<vmem>>, vector<1x32xf32>,
    %c672 = arith.constant 672 : index
    %c0_65 = arith.constant 0 : index
    %64 = vector.load %arg1[%c672, %c0_65] : memref<1024x32xf32, #tpu.memory_space<vmem>>, vector<32x32xf32>
    %cst_66 = arith.constant dense<0.000000e+00> : vector<1x32xf32>
    %65 = tpu.matmul %0, %64, %cst_66 {dimension_numbers = #tpu.dot_dimension_numbers<[1], [0], [0], [1], [0, 0, 1, 1], [], []>} : vector<1x32xf32>, vector<32x32xf32>, vector<1x32xf32> -> vector<1x32xf32>
    %c21 = arith.constant 21 : index
    %c0_67 = arith.constant 0 : index
    %66 = vector.load %arg2[%c21, %c0_67] : memref<32x32xf32, #tpu.memory_space<vmem>>, vector<1x32xf32>
    tpu.vector_store %arg2[%c21, %c0_67], %65 {strides = array<i32>} : memref<32x32xf32, #tpu.memory_space<vmem>>, vector<1x32xf32>,
    %c704 = arith.constant 704 : index
    %c0_68 = arith.constant 0 : index
    %67 = vector.load %arg1[%c704, %c0_68] : memref<1024x32xf32, #tpu.memory_space<vmem>>, vector<32x32xf32>
    %cst_69 = arith.constant dense<0.000000e+00> : vector<1x32xf32>
    %68 = tpu.matmul %0, %67, %cst_69 {dimension_numbers = #tpu.dot_dimension_numbers<[1], [0], [0], [1], [0, 0, 1, 1], [], []>} : vector<1x32xf32>, vector<32x32xf32>, vector<1x32xf32> -> vector<1x32xf32>
    %c22 = arith.constant 22 : index
    %c0_70 = arith.constant 0 : index
    %69 = vector.load %arg2[%c22, %c0_70] : memref<32x32xf32, #tpu.memory_space<vmem>>, vector<1x32xf32>
    tpu.vector_store %arg2[%c22, %c0_70], %68 {strides = array<i32>} : memref<32x32xf32, #tpu.memory_space<vmem>>, vector<1x32xf32>,
    %c736 = arith.constant 736 : index
    %c0_71 = arith.constant 0 : index
    %70 = vector.load %arg1[%c736, %c0_71] : memref<1024x32xf32, #tpu.memory_space<vmem>>, vector<32x32xf32>
    %cst_72 = arith.constant dense<0.000000e+00> : vector<1x32xf32>
    %71 = tpu.matmul %0, %70, %cst_72 {dimension_numbers = #tpu.dot_dimension_numbers<[1], [0], [0], [1], [0, 0, 1, 1], [], []>} : vector<1x32xf32>, vector<32x32xf32>, vector<1x32xf32> -> vector<1x32xf32>
    %c23 = arith.constant 23 : index
    %c0_73 = arith.constant 0 : index
    %72 = vector.load %arg2[%c23, %c0_73] : memref<32x32xf32, #tpu.memory_space<vmem>>, vector<1x32xf32>
    tpu.vector_store %arg2[%c23, %c0_73], %71 {strides = array<i32>} : memref<32x32xf32, #tpu.memory_space<vmem>>, vector<1x32xf32>,
    %c768 = arith.constant 768 : index
    %c0_74 = arith.constant 0 : index
    %73 = vector.load %arg1[%c768, %c0_74] : memref<1024x32xf32, #tpu.memory_space<vmem>>, vector<32x32xf32>
    %cst_75 = arith.constant dense<0.000000e+00> : vector<1x32xf32>
    %74 = tpu.matmul %0, %73, %cst_75 {dimension_numbers = #tpu.dot_dimension_numbers<[1], [0], [0], [1], [0, 0, 1, 1], [], []>} : vector<1x32xf32>, vector<32x32xf32>, vector<1x32xf32> -> vector<1x32xf32>
    %c24 = arith.constant 24 : index
    %c0_76 = arith.constant 0 : index
    %75 = vector.load %arg2[%c24, %c0_76] : memref<32x32xf32, #tpu.memory_space<vmem>>, vector<1x32xf32>
    tpu.vector_store %arg2[%c24, %c0_76], %74 {strides = array<i32>} : memref<32x32xf32, #tpu.memory_space<vmem>>, vector<1x32xf32>,
    %c800 = arith.constant 800 : index
    %c0_77 = arith.constant 0 : index
    %76 = vector.load %arg1[%c800, %c0_77] : memref<1024x32xf32, #tpu.memory_space<vmem>>, vector<32x32xf32>
    %cst_78 = arith.constant dense<0.000000e+00> : vector<1x32xf32>
    %77 = tpu.matmul %0, %76, %cst_78 {dimension_numbers = #tpu.dot_dimension_numbers<[1], [0], [0], [1], [0, 0, 1, 1], [], []>} : vector<1x32xf32>, vector<32x32xf32>, vector<1x32xf32> -> vector<1x32xf32>
    %c25 = arith.constant 25 : index
    %c0_79 = arith.constant 0 : index
    %78 = vector.load %arg2[%c25, %c0_79] : memref<32x32xf32, #tpu.memory_space<vmem>>, vector<1x32xf32>
    tpu.vector_store %arg2[%c25, %c0_79], %77 {strides = array<i32>} : memref<32x32xf32, #tpu.memory_space<vmem>>, vector<1x32xf32>,
    %c832 = arith.constant 832 : index
    %c0_80 = arith.constant 0 : index
    %79 = vector.load %arg1[%c832, %c0_80] : memref<1024x32xf32, #tpu.memory_space<vmem>>, vector<32x32xf32>
    %cst_81 = arith.constant dense<0.000000e+00> : vector<1x32xf32>
    %80 = tpu.matmul %0, %79, %cst_81 {dimension_numbers = #tpu.dot_dimension_numbers<[1], [0], [0], [1], [0, 0, 1, 1], [], []>} : vector<1x32xf32>, vector<32x32xf32>, vector<1x32xf32> -> vector<1x32xf32>
    %c26 = arith.constant 26 : index
    %c0_82 = arith.constant 0 : index
    %81 = vector.load %arg2[%c26, %c0_82] : memref<32x32xf32, #tpu.memory_space<vmem>>, vector<1x32xf32>
    tpu.vector_store %arg2[%c26, %c0_82], %80 {strides = array<i32>} : memref<32x32xf32, #tpu.memory_space<vmem>>, vector<1x32xf32>,
    %c864 = arith.constant 864 : index
    %c0_83 = arith.constant 0 : index
    %82 = vector.load %arg1[%c864, %c0_83] : memref<1024x32xf32, #tpu.memory_space<vmem>>, vector<32x32xf32>
    %cst_84 = arith.constant dense<0.000000e+00> : vector<1x32xf32>
    %83 = tpu.matmul %0, %82, %cst_84 {dimension_numbers = #tpu.dot_dimension_numbers<[1], [0], [0], [1], [0, 0, 1, 1], [], []>} : vector<1x32xf32>, vector<32x32xf32>, vector<1x32xf32> -> vector<1x32xf32>
    %c27 = arith.constant 27 : index
    %c0_85 = arith.constant 0 : index
    %84 = vector.load %arg2[%c27, %c0_85] : memref<32x32xf32, #tpu.memory_space<vmem>>, vector<1x32xf32>
    tpu.vector_store %arg2[%c27, %c0_85], %83 {strides = array<i32>} : memref<32x32xf32, #tpu.memory_space<vmem>>, vector<1x32xf32>,
    %c896 = arith.constant 896 : index
    %c0_86 = arith.constant 0 : index
    %85 = vector.load %arg1[%c896, %c0_86] : memref<1024x32xf32, #tpu.memory_space<vmem>>, vector<32x32xf32>
    %cst_87 = arith.constant dense<0.000000e+00> : vector<1x32xf32>
    %86 = tpu.matmul %0, %85, %cst_87 {dimension_numbers = #tpu.dot_dimension_numbers<[1], [0], [0], [1], [0, 0, 1, 1], [], []>} : vector<1x32xf32>, vector<32x32xf32>, vector<1x32xf32> -> vector<1x32xf32>
    %c28 = arith.constant 28 : index
    %c0_88 = arith.constant 0 : index
    %87 = vector.load %arg2[%c28, %c0_88] : memref<32x32xf32, #tpu.memory_space<vmem>>, vector<1x32xf32>
    tpu.vector_store %arg2[%c28, %c0_88], %86 {strides = array<i32>} : memref<32x32xf32, #tpu.memory_space<vmem>>, vector<1x32xf32>,
    %c928 = arith.constant 928 : index
    %c0_89 = arith.constant 0 : index
    %88 = vector.load %arg1[%c928, %c0_89] : memref<1024x32xf32, #tpu.memory_space<vmem>>, vector<32x32xf32>
    %cst_90 = arith.constant dense<0.000000e+00> : vector<1x32xf32>
    %89 = tpu.matmul %0, %88, %cst_90 {dimension_numbers = #tpu.dot_dimension_numbers<[1], [0], [0], [1], [0, 0, 1, 1], [], []>} : vector<1x32xf32>, vector<32x32xf32>, vector<1x32xf32> -> vector<1x32xf32>
    %c29 = arith.constant 29 : index
    %c0_91 = arith.constant 0 : index
    %90 = vector.load %arg2[%c29, %c0_91] : memref<32x32xf32, #tpu.memory_space<vmem>>, vector<1x32xf32>
    tpu.vector_store %arg2[%c29, %c0_91], %89 {strides = array<i32>} : memref<32x32xf32, #tpu.memory_space<vmem>>, vector<1x32xf32>,
    %c960 = arith.constant 960 : index
    %c0_92 = arith.constant 0 : index
    %91 = vector.load %arg1[%c960, %c0_92] : memref<1024x32xf32, #tpu.memory_space<vmem>>, vector<32x32xf32>
    %cst_93 = arith.constant dense<0.000000e+00> : vector<1x32xf32>
    %92 = tpu.matmul %0, %91, %cst_93 {dimension_numbers = #tpu.dot_dimension_numbers<[1], [0], [0], [1], [0, 0, 1, 1], [], []>} : vector<1x32xf32>, vector<32x32xf32>, vector<1x32xf32> -> vector<1x32xf32>
    %c30 = arith.constant 30 : index
    %c0_94 = arith.constant 0 : index
    %93 = vector.load %arg2[%c30, %c0_94] : memref<32x32xf32, #tpu.memory_space<vmem>>, vector<1x32xf32>
    tpu.vector_store %arg2[%c30, %c0_94], %92 {strides = array<i32>} : memref<32x32xf32, #tpu.memory_space<vmem>>, vector<1x32xf32>,
    %c992 = arith.constant 992 : index
    %c0_95 = arith.constant 0 : index
    %94 = vector.load %arg1[%c992, %c0_95] : memref<1024x32xf32, #tpu.memory_space<vmem>>, vector<32x32xf32>
    %cst_96 = arith.constant dense<0.000000e+00> : vector<1x32xf32>
    %95 = tpu.matmul %0, %94, %cst_96 {dimension_numbers = #tpu.dot_dimension_numbers<[1], [0], [0], [1], [0, 0, 1, 1], [], []>} : vector<1x32xf32>, vector<32x32xf32>, vector<1x32xf32> -> vector<1x32xf32>
    %c31 = arith.constant 31 : index
    %c0_97 = arith.constant 0 : index
    %96 = vector.load %arg2[%c31, %c0_97] : memref<32x32xf32, #tpu.memory_space<vmem>>, vector<1x32xf32>
    tpu.vector_store %arg2[%c31, %c0_97], %95 {strides = array<i32>} : memref<32x32xf32, #tpu.memory_space<vmem>>, vector<1x32xf32>,
    return
  }
}

</mosaic_0001>

<bundles_post_ra>
// kernel: tpu_custom_call.1
= control target key start
LH: loop header
LB: loop body
LE: loop exit
PB: predicated region body
PF: predicated region fallthrough
CT: control target
= control target key end

     0   :  { %v3005_v2 = vmov 0.0   ;;  %vm17_vm0 = vcmask 261120   ;;  %vm3006_vm1 = vmmov 0   ;;  %s3705_s0 = inlined_call_operand.vmem [shape: f32[1,32], index: 0, kind: input, shape index: {}]   ;;  %s3706_s1 = inlined_call_operand.vmem [shape: f32[1024,32], index: 1, kind: input, shape index: {}]   ;;  %s3707_s2 = inlined_call_operand.hbm [shape: f32[32,32], index: 2, kind: output, shape index: {}]  }
   0x1   :  { %v16_v0 = vld [vmem:[%s3706_s1 + $0x18] sm:$0xff]  ;;  %2626 = vmatprep.subr.mxu0 %v3005_v2  ;;  %2637 = vmatprep.subr.mxu1 %v3005_v2  ;;  %v15_v3 = vld [vmem:[%s3706_s1 + $0x10] sm:$0xff]  ;;  %v14_v5 = vld [vmem:[%s3706_s1 + $0x8] sm:$0xff] }
   0x2   :  { %v96_v1 = vld [vmem:[%s3706_s1 + $0x38] sm:$0xff]  ;;  %v95_v4 = vld [vmem:[%s3706_s1 + $0x30] sm:$0xff]  ;;  %2627 = vmatpush3.msra.mxu0 %v16_v0  ;;  %v94_v6 = vld [vmem:[%s3706_s1 + $0x28] sm:$0xff]  ;;  %2634 = vmatprep.mubr.msk.f32.mxu0 %vm3006_vm1, %v3005_v2 }
   0x3   :  { %2638 = vmatpush3.msra.mxu1 %v96_v1  ;;  %2628 = vmatprep.subr.mxu0 %v3005_v2  ;;  %v13_v7 = vld [vmem:[%s3706_s1] sm:$0xff]  ;;  %v171_v10 = vld [vmem:[%s3706_s1 + $0x58] sm:$0xff]  ;;  %v170_v12 = vld [vmem:[%s3706_s1 + $0x50] sm:$0xff] }
   0x4   :  { %2639 = vmatprep.subr.mxu1 %v3005_v2  ;;  %2629 = vmatpush3.msra.mxu0 %v15_v3  ;;  %v93_v8 = vld [vmem:[%s3706_s1 + $0x20] sm:$0xff]  ;;  %v246_v11 = vld [vmem:[%s3706_s1 + $0x78] sm:$0xff]  ;;  %v245_v13 = vld [vmem:[%s3706_s1 + $0x70] sm:$0xff] }
   0x5   :  { %2640 = vmatpush3.msra.mxu1 %v95_v4  ;;  %2630 = vmatprep.subr.mxu0 %v3005_v2  ;;  %v3060_v9 = vld [vmem:[%s3705_s0] sm:$0x1]  ;;  %v169_v14 = vld [vmem:[%s3706_s1 + $0x48] sm:$0xff]  ;;  %v321_v18 = vld [vmem:[%s3706_s1 + $0x98] sm:$0xff] }
   0x6   :  { %2641 = vmatprep.subr.mxu1 %v3005_v2  ;;  %2631 = vmatpush3.msra.mxu0 %v14_v5  ;;  %v244_v15 = vld [vmem:[%s3706_s1 + $0x68] sm:$0xff]  ;;  %v168_v16 = vld [vmem:[%s3706_s1 + $0x40] sm:$0xff]  ;;  %v396_v19 = vld [vmem:[%s3706_s1 + $0xb8] sm:$0xff] }
   0x7   :  { %2642 = vmatpush3.msra.mxu1 %v94_v6  ;;  %2632 = vmatprep.subr.mxu0 %v3005_v2  ;;  %v243_v17 = vld [vmem:[%s3706_s1 + $0x60] sm:$0xff]  ;;  %v320_v20 = vld [vmem:[%s3706_s1 + $0x90] sm:$0xff]  ;;  %v319_v22 = vld [vmem:[%s3706_s1 + $0x88] sm:$0xff] }
   0x8   :  { %2643 = vmatprep.subr.mxu1 %v3005_v2  ;;  %2633 = vmatpush3.msra.mxu0 %v13_v7  ;;  %v395_v21 = vld [vmem:[%s3706_s1 + $0xb0] sm:$0xff]  ;;  %v394_v23 = vld [vmem:[%s3706_s1 + $0xa8] sm:$0xff]  ;;  %v318_v24 = vld [vmem:[%s3706_s1 + $0x80] sm:$0xff] }
   0x9   :  { %2644 = vmatpush3.msra.mxu1 %v93_v8  ;;  %2645 = vmatprep.mubr.msk.f32.mxu1 %vm3006_vm1, %v3005_v2  ;;  %v393_v25 = vld [vmem:[%s3706_s1 + $0xa0] sm:$0xff]  ;;  %v471_v26 = vld [vmem:[%s3706_s1 + $0xd8] sm:$0xff]  ;;  %v470_v28 = vld [vmem:[%s3706_s1 + $0xd0] sm:$0xff] }
   0xa   :  { %2635 = vmatmul.mubr.msk.f32.vlgmr.msra.gmra.mxu0 %vm17_vm0, %v3060_v9  ;;  %2646 = vmatmul.mubr.msk.f32.vlgmr.msra.gmra.mxu1 %vm17_vm0, %v3060_v9  ;;  %v546_v27 = vld [vmem:[%s3706_s1 + $0xf8] sm:$0xff]  ;;  %v545_v29 = vld [vmem:[%s3706_s1 + $0xf0] sm:$0xff]  ;;  %v469_v30 = vld [vmem:[%s3706_s1 + $0xc8] sm:$0xff] }
   0xb   :  { %2648 = vmatprep.subr.mxu0 %v3005_v2  ;;  %2659 = vmatprep.subr.mxu1 %v3005_v2  ;;  %v544_v31 = vld [vmem:[%s3706_s1 + $0xe8] sm:$0xff]  ;;  %v468_v32 = vld [vmem:[%s3706_s1 + $0xc0] sm:$0xff]  ;;  %v621_v34 = vld [vmem:[%s3706_s1 + $0x118] sm:$0xff] }
   0xc   :  { %2649 = vmatpush3.msra.mxu0 %v171_v10  ;;  %2660 = vmatpush3.msra.mxu1 %v246_v11  ;;  %v543_v33 = vld [vmem:[%s3706_s1 + $0xe0] sm:$0xff]  ;;  %v696_v35 = vld [vmem:[%s3706_s1 + $0x138] sm:$0xff]  ;;  %v620_v36 = vld [vmem:[%s3706_s1 + $0x110] sm:$0xff] }
   0xd   :  { %2650 = vmatprep.subr.mxu0 %v3005_v2  ;;  %2661 = vmatprep.subr.mxu1 %v3005_v2  ;;  %v695_v37 = vld [vmem:[%s3706_s1 + $0x130] sm:$0xff]  ;;  %v619_v38 = vld [vmem:[%s3706_s1 + $0x108] sm:$0xff] }
   0xe   :  { %2651 = vmatpush3.msra.mxu0 %v170_v12  ;;  %2662 = vmatpush3.msra.mxu1 %v245_v13  ;;  %v694_v39 = vld [vmem:[%s3706_s1 + $0x128] sm:$0xff] }
   0xf   :  { %2652 = vmatprep.subr.mxu0 %v3005_v2  ;;  %2663 = vmatprep.subr.mxu1 %v3005_v2 }
  0x10   :  { %2653 = vmatpush3.msra.mxu0 %v169_v14  ;;  %2664 = vmatpush3.msra.mxu1 %v244_v15 }
  0x11   :  { %2654 = vmatprep.subr.mxu0 %v3005_v2  ;;  %2665 = vmatprep.subr.mxu1 %v3005_v2 }
  0x12   :  { %2655 = vmatpush3.msra.mxu0 %v168_v16  ;;  %2656 = vmatprep.mubr.msk.f32.mxu0 %vm3006_vm1, %v3005_v2 }
  0x13   :  { %2666 = vmatpush3.msra.mxu1 %v243_v17  ;;  %2667 = vmatprep.mubr.msk.f32.mxu1 %vm3006_vm1, %v3005_v2 }
  0x14   :  { %2657 = vmatmul.mubr.msk.f32.vlgmr.msra.gmra.mxu0 %vm17_vm0, %v3060_v9  ;;  %2668 = vmatmul.mubr.msk.f32.vlgmr.msra.gmra.mxu1 %vm17_vm0, %v3060_v9 }
  0x15   :  { %2670 = vmatprep.subr.mxu0 %v3005_v2  ;;  %2681 = vmatprep.subr.mxu1 %v3005_v2 }
  0x16   :  { %2671 = vmatpush3.msra.mxu0 %v321_v18  ;;  %2682 = vmatpush3.msra.mxu1 %v396_v19 }
  0x17   :  { %2672 = vmatprep.subr.mxu0 %v3005_v2  ;;  %2683 = vmatprep.subr.mxu1 %v3005_v2 }
  0x18   :  { %2673 = vmatpush3.msra.mxu0 %v320_v20  ;;  %2684 = vmatpush3.msra.mxu1 %v395_v21 }
  0x19   :  { %2674 = vmatprep.subr.mxu0 %v3005_v2  ;;  %2685 = vmatprep.subr.mxu1 %v3005_v2 }
  0x1a   :  { %2675 = vmatpush3.msra.mxu0 %v319_v22  ;;  %2686 = vmatpush3.msra.mxu1 %v394_v23 }
  0x1b   :  { %2676 = vmatprep.subr.mxu0 %v3005_v2  ;;  %2687 = vmatprep.subr.mxu1 %v3005_v2 }
  0x1c   :  { %2677 = vmatpush3.msra.mxu0 %v318_v24  ;;  %2678 = vmatprep.mubr.msk.f32.mxu0 %vm3006_vm1, %v3005_v2 }
  0x1d   :  { %2688 = vmatpush3.msra.mxu1 %v393_v25  ;;  %2689 = vmatprep.mubr.msk.f32.mxu1 %vm3006_vm1, %v3005_v2 }
  0x1e   :  { %2679 = vmatmul.mubr.msk.f32.vlgmr.msra.gmra.mxu0 %vm17_vm0, %v3060_v9  ;;  %2690 = vmatmul.mubr.msk.f32.vlgmr.msra.gmra.mxu1 %vm17_vm0, %v3060_v9 }
  0x1f   :  { %2692 = vmatprep.subr.mxu0 %v3005_v2  ;;  %2703 = vmatprep.subr.mxu1 %v3005_v2 }
  0x20   :  { %2693 = vmatpush3.msra.mxu0 %v471_v26  ;;  %2704 = vmatpush3.msra.mxu1 %v546_v27 }
  0x21   :  { %2694 = vmatprep.subr.mxu0 %v3005_v2  ;;  %2705 = vmatprep.subr.mxu1 %v3005_v2 }
  0x22   :  { %2695 = vmatpush3.msra.mxu0 %v470_v28  ;;  %2706 = vmatpush3.msra.mxu1 %v545_v29 }
  0x23   :  { %2696 = vmatprep.subr.mxu0 %v3005_v2  ;;  %2707 = vmatprep.subr.mxu1 %v3005_v2 }
  0x24   :  { %2697 = vmatpush3.msra.mxu0 %v469_v30  ;;  %2708 = vmatpush3.msra.mxu1 %v544_v31 }
  0x25   :  { %2698 = vmatprep.subr.mxu0 %v3005_v2  ;;  %2709 = vmatprep.subr.mxu1 %v3005_v2 }
  0x26   :  { %2699 = vmatpush3.msra.mxu0 %v468_v32  ;;  %2700 = vmatprep.mubr.msk.f32.mxu0 %vm3006_vm1, %v3005_v2 }
  0x27   :  { %2710 = vmatpush3.msra.mxu1 %v543_v33  ;;  %2711 = vmatprep.mubr.msk.f32.mxu1 %vm3006_vm1, %v3005_v2 }
  0x28   :  { %2701 = vmatmul.mubr.msk.f32.vlgmr.msra.gmra.mxu0 %vm17_vm0, %v3060_v9  ;;  %2712 = vmatmul.mubr.msk.f32.vlgmr.msra.gmra.mxu1 %vm17_vm0, %v3060_v9 }
  0x29   :  { %2714 = vmatprep.subr.mxu0 %v3005_v2  ;;  %2725 = vmatprep.subr.mxu1 %v3005_v2 }
  0x2a   :  { %2715 = vmatpush3.msra.mxu0 %v621_v34  ;;  %2726 = vmatpush3.msra.mxu1 %v696_v35 }
  0x2b   :  { %2716 = vmatprep.subr.mxu0 %v3005_v2  ;;  %2727 = vmatprep.subr.mxu1 %v3005_v2 }
  0x2c   :  { %7 = vsyncpa [#allocation3], 0  ;;  %2717 = vmatpush3.msra.mxu0 %v620_v36  ;;  %2728 = vmatpush3.msra.mxu1 %v695_v37  ;;  %v618_v40 = vld [vmem:[%s3706_s1 + $0x100] sm:$0xff]  ;;  %v771_v42 = vld [vmem:[%s3706_s1 + $0x158] sm:$0xff]  ;;  %vm91_vm2 = vcmask 253952  }
  0x2d   :  { %2718 = vmatprep.subr.mxu0 %v3005_v2  ;;  %2729 = vmatprep.subr.mxu1 %v3005_v2  ;;  %v693_v41 = vld [vmem:[%s3706_s1 + $0x120] sm:$0xff]  ;;  %v846_v43 = vld [vmem:[%s3706_s1 + $0x178] sm:$0xff]  ;;  %v770_v44 = vld [vmem:[%s3706_s1 + $0x150] sm:$0xff] }
  0x2e   :  { %2719 = vmatpush3.msra.mxu0 %v619_v38  ;;  %2730 = vmatpush3.msra.mxu1 %v694_v39  ;;  %v845_v45 = vld [vmem:[%s3706_s1 + $0x170] sm:$0xff]  ;;  %v769_v46 = vld [vmem:[%s3706_s1 + $0x148] sm:$0xff]  ;;  %v768_v48 = vld [vmem:[%s3706_s1 + $0x140] sm:$0xff] }
  0x2f   :  { %2720 = vmatprep.subr.mxu0 %v3005_v2  ;;  %2731 = vmatprep.subr.mxu1 %v3005_v2  ;;  %v844_v47 = vld [vmem:[%s3706_s1 + $0x168] sm:$0xff]  ;;  %v843_v49 = vld [vmem:[%s3706_s1 + $0x160] sm:$0xff]  ;;  %v921_v50 = vld [vmem:[%s3706_s1 + $0x198] sm:$0xff] }
  0x30   :  { %2721 = vmatpush3.msra.mxu0 %v618_v40  ;;  %2722 = vmatprep.mubr.msk.f32.mxu0 %vm3006_vm1, %v3005_v2  ;;  %v996_v51 = vld [vmem:[%s3706_s1 + $0x1b8] sm:$0xff]  ;;  %v920_v52 = vld [vmem:[%s3706_s1 + $0x190] sm:$0xff]  ;;  %v919_v54 = vld [vmem:[%s3706_s1 + $0x188] sm:$0xff] }
  0x31   :  { %2732 = vmatpush3.msra.mxu1 %v693_v41  ;;  %2733 = vmatprep.mubr.msk.f32.mxu1 %vm3006_vm1, %v3005_v2  ;;  %v995_v53 = vld [vmem:[%s3706_s1 + $0x1b0] sm:$0xff]  ;;  %v994_v55 = vld [vmem:[%s3706_s1 + $0x1a8] sm:$0xff]  ;;  %v918_v56 = vld [vmem:[%s3706_s1 + $0x180] sm:$0xff] }
  0x32   :  { %2723 = vmatmul.mubr.msk.f32.vlgmr.msra.gmra.mxu0 %vm17_vm0, %v3060_v9  ;;  %2734 = vmatmul.mubr.msk.f32.vlgmr.msra.gmra.mxu1 %vm17_vm0, %v3060_v9  ;;  %v993_v57 = vld [vmem:[%s3706_s1 + $0x1a0] sm:$0xff]  ;;  %v1071_v58 = vld [vmem:[%s3706_s1 + $0x1d8] sm:$0xff]  ;;  %v1070_v60 = vld [vmem:[%s3706_s1 + $0x1d0] sm:$0xff] }
  0x33   :  { %2736 = vmatprep.subr.mxu0 %v3005_v2  ;;  %2747 = vmatprep.subr.mxu1 %v3005_v2  ;;  %v1146_v59 = vld [vmem:[%s3706_s1 + $0x1f8] sm:$0xff]  ;;  %v1145_v61 = vld [vmem:[%s3706_s1 + $0x1f0] sm:$0xff]  ;;  %v1069_v62 = vld [vmem:[%s3706_s1 + $0x1c8] sm:$0xff] }
  0x34   :  { %2737 = vmatpush3.msra.mxu0 %v771_v42  ;;  %2748 = vmatpush3.msra.mxu1 %v846_v43  ;;  %v1144_v63 = vld [vmem:[%s3706_s1 + $0x1e8] sm:$0xff]  ;;  %v1068_v0 = vld [vmem:[%s3706_s1 + $0x1c0] sm:$0xff]  ;;  %v1221_v3 = vld [vmem:[%s3706_s1 + $0x218] sm:$0xff] }
  0x35   :  { %2738 = vmatprep.subr.mxu0 %v3005_v2  ;;  %2749 = vmatprep.subr.mxu1 %v3005_v2  ;;  %v1143_v1 = vld [vmem:[%s3706_s1 + $0x1e0] sm:$0xff]  ;;  %v1296_v4 = vld [vmem:[%s3706_s1 + $0x238] sm:$0xff]  ;;  %v1220_v5 = vld [vmem:[%s3706_s1 + $0x210] sm:$0xff] }
  0x36   :  { %2739 = vmatpush3.msra.mxu0 %v770_v44  ;;  %2750 = vmatpush3.msra.mxu1 %v845_v45  ;;  %v1295_v6 = vld [vmem:[%s3706_s1 + $0x230] sm:$0xff]  ;;  %v1219_v7 = vld [vmem:[%s3706_s1 + $0x208] sm:$0xff]  ;;  %v1218_v10 = vld [vmem:[%s3706_s1 + $0x200] sm:$0xff] }
  0x37   :  { %2740 = vmatprep.subr.mxu0 %v3005_v2  ;;  %2751 = vmatprep.subr.mxu1 %v3005_v2  ;;  %v1294_v8 = vld [vmem:[%s3706_s1 + $0x228] sm:$0xff]  ;;  %v1293_v11 = vld [vmem:[%s3706_s1 + $0x220] sm:$0xff]  ;;  %v1371_v12 = vld [vmem:[%s3706_s1 + $0x258] sm:$0xff] }
  0x38   :  { %2741 = vmatpush3.msra.mxu0 %v769_v46  ;;  %2752 = vmatpush3.msra.mxu1 %v844_v47  ;;  %v1446_v13 = vld [vmem:[%s3706_s1 + $0x278] sm:$0xff]  ;;  %v1370_v14 = vld [vmem:[%s3706_s1 + $0x250] sm:$0xff]  ;;  %v1369_v16 = vld [vmem:[%s3706_s1 + $0x248] sm:$0xff] }
  0x39   :  { %2742 = vmatprep.subr.mxu0 %v3005_v2  ;;  %2753 = vmatprep.subr.mxu1 %v3005_v2  ;;  %v1445_v15 = vld [vmem:[%s3706_s1 + $0x270] sm:$0xff]  ;;  %v1444_v17 = vld [vmem:[%s3706_s1 + $0x268] sm:$0xff]  ;;  %v1368_v18 = vld [vmem:[%s3706_s1 + $0x240] sm:$0xff] }
  0x3a   :  { %2743 = vmatpush3.msra.mxu0 %v768_v48  ;;  %2744 = vmatprep.mubr.msk.f32.mxu0 %vm3006_vm1, %v3005_v2  ;;  %v1443_v19 = vld [vmem:[%s3706_s1 + $0x260] sm:$0xff]  ;;  %v1521_v20 = vld [vmem:[%s3706_s1 + $0x298] sm:$0xff]  ;;  %v1520_v22 = vld [vmem:[%s3706_s1 + $0x290] sm:$0xff] }
  0x3b   :  { %2754 = vmatpush3.msra.mxu1 %v843_v49  ;;  %2755 = vmatprep.mubr.msk.f32.mxu1 %vm3006_vm1, %v3005_v2  ;;  %v1596_v21 = vld [vmem:[%s3706_s1 + $0x2b8] sm:$0xff]  ;;  %v1595_v23 = vld [vmem:[%s3706_s1 + $0x2b0] sm:$0xff]  ;;  %v1519_v24 = vld [vmem:[%s3706_s1 + $0x288] sm:$0xff] }
  0x3c   :  { %2745 = vmatmul.mubr.msk.f32.vlgmr.msra.gmra.mxu0 %vm17_vm0, %v3060_v9  ;;  %2756 = vmatmul.mubr.msk.f32.vlgmr.msra.gmra.mxu1 %vm17_vm0, %v3060_v9  ;;  %v1594_v25 = vld [vmem:[%s3706_s1 + $0x2a8] sm:$0xff]  ;;  %v1518_v26 = vld [vmem:[%s3706_s1 + $0x280] sm:$0xff]  ;;  %v1671_v28 = vld [vmem:[%s3706_s1 + $0x2d8] sm:$0xff] }
  0x3d   :  { %2758 = vmatprep.subr.mxu0 %v3005_v2  ;;  %2769 = vmatprep.subr.mxu1 %v3005_v2  ;;  %v1593_v27 = vld [vmem:[%s3706_s1 + $0x2a0] sm:$0xff]  ;;  %v1746_v29 = vld [vmem:[%s3706_s1 + $0x2f8] sm:$0xff]  ;;  %v1670_v30 = vld [vmem:[%s3706_s1 + $0x2d0] sm:$0xff] }
  0x3e   :  { %2759 = vmatpush3.msra.mxu0 %v921_v50  ;;  %2770 = vmatpush3.msra.mxu1 %v996_v51  ;;  %v1745_v31 = vld [vmem:[%s3706_s1 + $0x2f0] sm:$0xff]  ;;  %v1669_v32 = vld [vmem:[%s3706_s1 + $0x2c8] sm:$0xff]  ;;  %v1668_v34 = vld [vmem:[%s3706_s1 + $0x2c0] sm:$0xff] }
  0x3f   :  { %2760 = vmatprep.subr.mxu0 %v3005_v2  ;;  %2771 = vmatprep.subr.mxu1 %v3005_v2  ;;  %v1744_v33 = vld [vmem:[%s3706_s1 + $0x2e8] sm:$0xff]  ;;  %v1743_v35 = vld [vmem:[%s3706_s1 + $0x2e0] sm:$0xff]  ;;  %v1821_v36 = vld [vmem:[%s3706_s1 + $0x318] sm:$0xff] }
  0x40   :  { %2761 = vmatpush3.msra.mxu0 %v920_v52  ;;  %2772 = vmatpush3.msra.mxu1 %v995_v53  ;;  %v1896_v37 = vld [vmem:[%s3706_s1 + $0x338] sm:$0xff]  ;;  %v1820_v38 = vld [vmem:[%s3706_s1 + $0x310] sm:$0xff]  ;;  %v1819_v40 = vld [vmem:[%s3706_s1 + $0x308] sm:$0xff] }
  0x41   :  { %2762 = vmatprep.subr.mxu0 %v3005_v2  ;;  %2773 = vmatprep.subr.mxu1 %v3005_v2  ;;  %v1895_v39 = vld [vmem:[%s3706_s1 + $0x330] sm:$0xff]  ;;  %v1894_v41 = vld [vmem:[%s3706_s1 + $0x328] sm:$0xff]  ;;  %v1818_v42 = vld [vmem:[%s3706_s1 + $0x300] sm:$0xff] }
  0x42   :  { %2763 = vmatpush3.msra.mxu0 %v919_v54  ;;  %2774 = vmatpush3.msra.mxu1 %v994_v55  ;;  %v1893_v43 = vld [vmem:[%s3706_s1 + $0x320] sm:$0xff]  ;;  %v1971_v44 = vld [vmem:[%s3706_s1 + $0x358] sm:$0xff]  ;;  %v1970_v46 = vld [vmem:[%s3706_s1 + $0x350] sm:$0xff] }
  0x43   :  { %2764 = vmatprep.subr.mxu0 %v3005_v2  ;;  %2775 = vmatprep.subr.mxu1 %v3005_v2  ;;  %v2046_v45 = vld [vmem:[%s3706_s1 + $0x378] sm:$0xff]  ;;  %v2045_v47 = vld [vmem:[%s3706_s1 + $0x370] sm:$0xff]  ;;  %v1969_v48 = vld [vmem:[%s3706_s1 + $0x348] sm:$0xff] }
  0x44   :  { %2765 = vmatpush3.msra.mxu0 %v918_v56  ;;  %2766 = vmatprep.mubr.msk.f32.mxu0 %vm3006_vm1, %v3005_v2  ;;  %v2044_v49 = vld [vmem:[%s3706_s1 + $0x368] sm:$0xff]  ;;  %v1968_v50 = vld [vmem:[%s3706_s1 + $0x340] sm:$0xff]  ;;  %v2121_v52 = vld [vmem:[%s3706_s1 + $0x398] sm:$0xff] }
  0x45   :  { %2776 = vmatpush3.msra.mxu1 %v993_v57  ;;  %2777 = vmatprep.mubr.msk.f32.mxu1 %vm3006_vm1, %v3005_v2  ;;  %v2043_v51 = vld [vmem:[%s3706_s1 + $0x360] sm:$0xff]  ;;  %v2196_v53 = vld [vmem:[%s3706_s1 + $0x3b8] sm:$0xff]  ;;  %v2120_v54 = vld [vmem:[%s3706_s1 + $0x390] sm:$0xff] }
  0x46   :  { %2767 = vmatmul.mubr.msk.f32.vlgmr.msra.gmra.mxu0 %vm17_vm0, %v3060_v9  ;;  %2778 = vmatmul.mubr.msk.f32.vlgmr.msra.gmra.mxu1 %vm17_vm0, %v3060_v9  ;;  %v2195_v55 = vld [vmem:[%s3706_s1 + $0x3b0] sm:$0xff]  ;;  %v2119_v56 = vld [vmem:[%s3706_s1 + $0x388] sm:$0xff] }
  0x47   :  { %2780 = vmatprep.subr.mxu0 %v3005_v2  ;;  %2791 = vmatprep.subr.mxu1 %v3005_v2  ;;  %v2194_v57 = vld [vmem:[%s3706_s1 + $0x3a8] sm:$0xff] }
  0x48   :  { %2781 = vmatpush3.msra.mxu0 %v1071_v58  ;;  %2792 = vmatpush3.msra.mxu1 %v1146_v59  ;;  %v2118_v58 = vld [vmem:[%s3706_s1 + $0x380] sm:$0xff] }
  0x49   :  { %2782 = vmatprep.subr.mxu0 %v3005_v2  ;;  %2793 = vmatprep.subr.mxu1 %v3005_v2  ;;  %v2193_v59 = vld [vmem:[%s3706_s1 + $0x3a0] sm:$0xff] }
  0x4a   :  { %2783 = vmatpush3.msra.mxu0 %v1070_v60  ;;  %2794 = vmatpush3.msra.mxu1 %v1145_v61  ;;  %v2271_v60 = vld [vmem:[%s3706_s1 + $0x3d8] sm:$0xff] }
  0x4b   :  { %2784 = vmatprep.subr.mxu0 %v3005_v2  ;;  %2795 = vmatprep.subr.mxu1 %v3005_v2  ;;  %v2346_v61 = vld [vmem:[%s3706_s1 + $0x3f8] sm:$0xff] }
  0x4c   :  { %2785 = vmatpush3.msra.mxu0 %v1069_v62  ;;  %2796 = vmatpush3.msra.mxu1 %v1144_v63  ;;  %v2270_v62 = vld [vmem:[%s3706_s1 + $0x3d0] sm:$0xff] }
  0x4d   :  { %2786 = vmatprep.subr.mxu0 %v3005_v2  ;;  %2797 = vmatprep.subr.mxu1 %v3005_v2  ;;  %v2345_v63 = vld [vmem:[%s3706_s1 + $0x3f0] sm:$0xff] }
  0x4e   :  { %2787 = vmatpush3.msra.mxu0 %v1068_v0  ;;  %2788 = vmatprep.mubr.msk.f32.mxu0 %vm3006_vm1, %v3005_v2  ;;  %v2269_v0 = vld [vmem:[%s3706_s1 + $0x3c8] sm:$0xff] }
  0x4f   :  { %2798 = vmatpush3.msra.mxu1 %v1143_v1  ;;  %2799 = vmatprep.mubr.msk.f32.mxu1 %vm3006_vm1, %v3005_v2  ;;  %v2344_v1 = vld [vmem:[%s3706_s1 + $0x3e8] sm:$0xff] }
  0x50   :  { %2789 = vmatmul.mubr.msk.f32.vlgmr.msra.gmra.mxu0 %vm17_vm0, %v3060_v9  ;;  %2800 = vmatmul.mubr.msk.f32.vlgmr.msra.gmra.mxu1 %vm17_vm0, %v3060_v9 }
  0x51   :  { %2802 = vmatprep.subr.mxu0 %v3005_v2  ;;  %2813 = vmatprep.subr.mxu1 %v3005_v2 }
  0x52   :  { %2803 = vmatpush3.msra.mxu0 %v1221_v3  ;;  %2814 = vmatpush3.msra.mxu1 %v1296_v4  ;;  %v2268_v3 = vld [vmem:[%s3706_s1 + $0x3c0] sm:$0xff] }
  0x53   :  { %2804 = vmatprep.subr.mxu0 %v3005_v2  ;;  %2815 = vmatprep.subr.mxu1 %v3005_v2  ;;  %v2343_v4 = vld [vmem:[%s3706_s1 + $0x3e0] sm:$0xff]  ;;  %s3007_s1 = smov [#allocation2]  }
  0x54   :  { %2805 = vmatpush3.msra.mxu0 %v1220_v5  ;;  %2816 = vmatpush3.msra.mxu1 %v1295_v6  ;;  %s2423_s6 = sshll.u32 %s3007_s1, 4  ;;  %s2424_s6 = int_to_ptr.vmem [resolvable:$true] %s2423_s6 }
  0x55   :  { %2806 = vmatprep.subr.mxu0 %v3005_v2  ;;  %2817 = vmatprep.subr.mxu1 %v3005_v2  ;;  %s2983_s7 = scalar_lea.vmem %s2424_s6, 512  ;;  %p2988_p1 = scmp.lt.s32.totalorder %s2424_s6, %s2424_s6 }
  0x56   :  { %2807 = vmatpush3.msra.mxu0 %v1219_v7  ;;  %2818 = vmatpush3.msra.mxu1 %v1294_v8  ;;  %p2984_p0 = scmp.ne.s32.totalorder %s2424_s6, %s2983_s7  ;;  %p2989_p2 = scmp.lt.s32.totalorder %s2983_s7, %s2983_s7 }
  0x57   :  { %2808 = vmatprep.subr.mxu0 %v3005_v2  ;;  %2819 = vmatprep.subr.mxu1 %v3005_v2 }
  0x58   :  { %2809 = vmatpush3.msra.mxu0 %v1218_v10  ;;  %2810 = vmatprep.mubr.msk.f32.mxu0 %vm3006_vm1, %v3005_v2  ;;  %p2990_p3 = por %p2989_p2, %p2988_p1 }
  0x59   :  { %2820 = vmatpush3.msra.mxu1 %v1293_v11  ;;  %2821 = vmatprep.mubr.msk.f32.mxu1 %vm3006_vm1, %v3005_v2 }
  0x5a   :  { %2811 = vmatmul.mubr.msk.f32.vlgmr.msra.gmra.mxu0 %vm17_vm0, %v3060_v9  ;;  %2822 = vmatmul.mubr.msk.f32.vlgmr.msra.gmra.mxu1 %vm17_vm0, %v3060_v9  ;;  %p2991_p4 = pnand %p2990_p3, %p2984_p0 }
  0x5b   :  { %2824 = vmatprep.subr.mxu0 %v3005_v2  ;;  %2835 = vmatprep.subr.mxu1 %v3005_v2 }
  0x5c   :  { %2825 = vmatpush3.msra.mxu0 %v1371_v12  ;;  %2836 = vmatpush3.msra.mxu1 %v1446_v13 }
  0x5d   :  { %2826 = vmatprep.subr.mxu0 %v3005_v2  ;;  %2837 = vmatprep.subr.mxu1 %v3005_v2 }
  0x5e   :  { %2827 = vmatpush3.msra.mxu0 %v1370_v14  ;;  %2838 = vmatpush3.msra.mxu1 %v1445_v15 }
  0x5f   :  { %2828 = vmatprep.subr.mxu0 %v3005_v2  ;;  %2839 = vmatprep.subr.mxu1 %v3005_v2 }
  0x60   :  { %2829 = vmatpush3.msra.mxu0 %v1369_v16  ;;  %2840 = vmatpush3.msra.mxu1 %v1444_v17 }
  0x61   :  { %2830 = vmatprep.subr.mxu0 %v3005_v2  ;;  %2841 = vmatprep.subr.mxu1 %v3005_v2 }
  0x62   :  { %2831 = vmatpush3.msra.mxu0 %v1368_v18  ;;  %2832 = vmatprep.mubr.msk.f32.mxu0 %vm3006_vm1, %v3005_v2 }
  0x63   :  { %2842 = vmatpush3.msra.mxu1 %v1443_v19  ;;  %2843 = vmatprep.mubr.msk.f32.mxu1 %vm3006_vm1, %v3005_v2 }
  0x64   :  { %2833 = vmatmul.mubr.msk.f32.vlgmr.msra.gmra.mxu0 %vm17_vm0, %v3060_v9  ;;  %2844 = vmatmul.mubr.msk.f32.vlgmr.msra.gmra.mxu1 %vm17_vm0, %v3060_v9 }
  0x65   :  { %2846 = vmatprep.subr.mxu0 %v3005_v2  ;;  %2857 = vmatprep.subr.mxu1 %v3005_v2 }
  0x66   :  { %2847 = vmatpush3.msra.mxu0 %v1521_v20  ;;  %2858 = vmatpush3.msra.mxu1 %v1596_v21 }
  0x67   :  { %2848 = vmatprep.subr.mxu0 %v3005_v2  ;;  %2859 = vmatprep.subr.mxu1 %v3005_v2 }
  0x68   :  { %2849 = vmatpush3.msra.mxu0 %v1520_v22  ;;  %2860 = vmatpush3.msra.mxu1 %v1595_v23 }
  0x69   :  { %2850 = vmatprep.subr.mxu0 %v3005_v2  ;;  %2861 = vmatprep.subr.mxu1 %v3005_v2 }
  0x6a   :  { %2851 = vmatpush3.msra.mxu0 %v1519_v24  ;;  %2862 = vmatpush3.msra.mxu1 %v1594_v25 }
  0x6b   :  { %2852 = vmatprep.subr.mxu0 %v3005_v2  ;;  %2863 = vmatprep.subr.mxu1 %v3005_v2 }
  0x6c   :  { %2853 = vmatpush3.msra.mxu0 %v1518_v26  ;;  %2854 = vmatprep.mubr.msk.f32.mxu0 %vm3006_vm1, %v3005_v2 }
  0x6d   :  { %2864 = vmatpush3.msra.mxu1 %v1593_v27  ;;  %2865 = vmatprep.mubr.msk.f32.mxu1 %vm3006_vm1, %v3005_v2 }
  0x6e   :  { %2855 = vmatmul.mubr.msk.f32.vlgmr.msra.gmra.mxu0 %vm17_vm0, %v3060_v9  ;;  %2866 = vmatmul.mubr.msk.f32.vlgmr.msra.gmra.mxu1 %vm17_vm0, %v3060_v9 }
  0x6f   :  { %2868 = vmatprep.subr.mxu0 %v3005_v2  ;;  %2879 = vmatprep.subr.mxu1 %v3005_v2 }
  0x70   :  { %2869 = vmatpush3.msra.mxu0 %v1671_v28  ;;  %2880 = vmatpush3.msra.mxu1 %v1746_v29 }
  0x71   :  { %2870 = vmatprep.subr.mxu0 %v3005_v2  ;;  %2881 = vmatprep.subr.mxu1 %v3005_v2 }
  0x72   :  { %2871 = vmatpush3.msra.mxu0 %v1670_v30  ;;  %2882 = vmatpush3.msra.mxu1 %v1745_v31 }
  0x73   :  { %2872 = vmatprep.subr.mxu0 %v3005_v2  ;;  %2883 = vmatprep.subr.mxu1 %v3005_v2 }
  0x74   :  { %2873 = vmatpush3.msra.mxu0 %v1669_v32  ;;  %2884 = vmatpush3.msra.mxu1 %v1744_v33 }
  0x75   :  { %2874 = vmatprep.subr.mxu0 %v3005_v2  ;;  %2885 = vmatprep.subr.mxu1 %v3005_v2 }
  0x76   :  { %2875 = vmatpush3.msra.mxu0 %v1668_v34  ;;  %2876 = vmatprep.mubr.msk.f32.mxu0 %vm3006_vm1, %v3005_v2 }
  0x77   :  { %2886 = vmatpush3.msra.mxu1 %v1743_v35  ;;  %2887 = vmatprep.mubr.msk.f32.mxu1 %vm3006_vm1, %v3005_v2 }
  0x78   :  { %2877 = vmatmul.mubr.msk.f32.vlgmr.msra.gmra.mxu0 %vm17_vm0, %v3060_v9  ;;  %2888 = vmatmul.mubr.msk.f32.vlgmr.msra.gmra.mxu1 %vm17_vm0, %v3060_v9 }
  0x79   :  { %2890 = vmatprep.subr.mxu0 %v3005_v2  ;;  %2901 = vmatprep.subr.mxu1 %v3005_v2 }
  0x7a   :  { %2891 = vmatpush3.msra.mxu0 %v1821_v36  ;;  %2902 = vmatpush3.msra.mxu1 %v1896_v37 }
  0x7b   :  { %2892 = vmatprep.subr.mxu0 %v3005_v2  ;;  %2903 = vmatprep.subr.mxu1 %v3005_v2 }
  0x7c   :  { %2893 = vmatpush3.msra.mxu0 %v1820_v38  ;;  %2904 = vmatpush3.msra.mxu1 %v1895_v39 }
  0x7d   :  { %2894 = vmatprep.subr.mxu0 %v3005_v2  ;;  %2905 = vmatprep.subr.mxu1 %v3005_v2 }
  0x7e   :  { %2895 = vmatpush3.msra.mxu0 %v1819_v40  ;;  %2906 = vmatpush3.msra.mxu1 %v1894_v41 }
  0x7f   :  { %2896 = vmatprep.subr.mxu0 %v3005_v2  ;;  %2907 = vmatprep.subr.mxu1 %v3005_v2 }
  0x80   :  { %2897 = vmatpush3.msra.mxu0 %v1818_v42  ;;  %2898 = vmatprep.mubr.msk.f32.mxu0 %vm3006_vm1, %v3005_v2 }
  0x81   :  { %2908 = vmatpush3.msra.mxu1 %v1893_v43  ;;  %2909 = vmatprep.mubr.msk.f32.mxu1 %vm3006_vm1, %v3005_v2 }
  0x82   :  { %2899 = vmatmul.mubr.msk.f32.vlgmr.msra.gmra.mxu0 %vm17_vm0, %v3060_v9  ;;  %2910 = vmatmul.mubr.msk.f32.vlgmr.msra.gmra.mxu1 %vm17_vm0, %v3060_v9 }
  0x83   :  { %2912 = vmatprep.subr.mxu0 %v3005_v2  ;;  %2923 = vmatprep.subr.mxu1 %v3005_v2 }
  0x84   :  { %2913 = vmatpush3.msra.mxu0 %v1971_v44  ;;  %2924 = vmatpush3.msra.mxu1 %v2046_v45 }
  0x85   :  { %2914 = vmatprep.subr.mxu0 %v3005_v2  ;;  %2925 = vmatprep.subr.mxu1 %v3005_v2 }
  0x86   :  { %2915 = vmatpush3.msra.mxu0 %v1970_v46  ;;  %2926 = vmatpush3.msra.mxu1 %v2045_v47 }
  0x87   :  { %2916 = vmatprep.subr.mxu0 %v3005_v2  ;;  %2927 = vmatprep.subr.mxu1 %v3005_v2 }
  0x88   :  { %2917 = vmatpush3.msra.mxu0 %v1969_v48  ;;  %2928 = vmatpush3.msra.mxu1 %v2044_v49 }
  0x89   :  { %2918 = vmatprep.subr.mxu0 %v3005_v2  ;;  %2929 = vmatprep.subr.mxu1 %v3005_v2 }
  0x8a   :  { %2919 = vmatpush3.msra.mxu0 %v1968_v50  ;;  %2920 = vmatprep.mubr.msk.f32.mxu0 %vm3006_vm1, %v3005_v2 }
  0x8b   :  { %2930 = vmatpush3.msra.mxu1 %v2043_v51  ;;  %2931 = vmatprep.mubr.msk.f32.mxu1 %vm3006_vm1, %v3005_v2 }
  0x8c   :  { %2921 = vmatmul.mubr.msk.f32.vlgmr.msra.gmra.mxu0 %vm17_vm0, %v3060_v9  ;;  %2932 = vmatmul.mubr.msk.f32.vlgmr.msra.gmra.mxu1 %vm17_vm0, %v3060_v9 }
  0x8d   :  { %2934 = vmatprep.subr.mxu0 %v3005_v2  ;;  %2945 = vmatprep.subr.mxu1 %v3005_v2 }
  0x8e   :  { %2935 = vmatpush3.msra.mxu0 %v2121_v52  ;;  %2946 = vmatpush3.msra.mxu1 %v2196_v53 }
  0x8f   :  { %2936 = vmatprep.subr.mxu0 %v3005_v2  ;;  %2947 = vmatprep.subr.mxu1 %v3005_v2 }
  0x90   :  { %2937 = vmatpush3.msra.mxu0 %v2120_v54  ;;  %2948 = vmatpush3.msra.mxu1 %v2195_v55 }
  0x91   :  { %2938 = vmatprep.subr.mxu0 %v3005_v2  ;;  %2949 = vmatprep.subr.mxu1 %v3005_v2 }
  0x92   :  { %2939 = vmatpush3.msra.mxu0 %v2119_v56  ;;  %2950 = vmatpush3.msra.mxu1 %v2194_v57 }
  0x93   :  { %2940 = vmatprep.subr.mxu0 %v3005_v2  ;;  %2951 = vmatprep.subr.mxu1 %v3005_v2 }
  0x94   :  { %2941 = vmatpush3.msra.mxu0 %v2118_v58  ;;  %2942 = vmatprep.mubr.msk.f32.mxu0 %vm3006_vm1, %v3005_v2 }
  0x95   :  { %2952 = vmatpush3.msra.mxu1 %v2193_v59  ;;  %2953 = vmatprep.mubr.msk.f32.mxu1 %vm3006_vm1, %v3005_v2 }
  0x96   :  { %2943 = vmatmul.mubr.msk.f32.vlgmr.msra.gmra.mxu0 %vm17_vm0, %v3060_v9  ;;  %2954 = vmatmul.mubr.msk.f32.vlgmr.msra.gmra.mxu1 %vm17_vm0, %v3060_v9 }
  0x97   :  { %2956 = vmatprep.subr.mxu0 %v3005_v2  ;;  %2967 = vmatprep.subr.mxu1 %v3005_v2 }
  0x98   :  { %2957 = vmatpush3.msra.mxu0 %v2271_v60  ;;  %2968 = vmatpush3.msra.mxu1 %v2346_v61 }
  0x99   :  { %2958 = vmatprep.subr.mxu0 %v3005_v2  ;;  %2969 = vmatprep.subr.mxu1 %v3005_v2 }
  0x9a   :  { %2959 = vmatpush3.msra.mxu0 %v2270_v62  ;;  %2970 = vmatpush3.msra.mxu1 %v2345_v63 }
  0x9b   :  { %2960 = vmatprep.subr.mxu0 %v3005_v2  ;;  %2971 = vmatprep.subr.mxu1 %v3005_v2 }
  0x9c   :  { %2961 = vmatpush3.msra.mxu0 %v2269_v0  ;;  %2972 = vmatpush3.msra.mxu1 %v2344_v1 }
  0x9d   :  { %2962 = vmatprep.subr.mxu0 %v3005_v2  ;;  %2973 = vmatprep.subr.mxu1 %v3005_v2 }
  0x9e   :  { %2963 = vmatpush3.msra.mxu0 %v2268_v3  ;;  %2964 = vmatprep.mubr.msk.f32.mxu0 %vm3006_vm1, %v3005_v2 }
  0x9f   :  { %2974 = vmatpush3.msra.mxu1 %v2343_v4  ;;  %2975 = vmatprep.mubr.msk.f32.mxu1 %vm3006_vm1, %v3005_v2 }
  0xa0   :  { %2965 = vmatmul.mubr.msk.f32.vlgmr.msra.gmra.mxu0 %vm17_vm0, %v3060_v9  ;;  %2976 = vmatmul.mubr.msk.f32.vlgmr.msra.gmra.mxu1 %vm17_vm0, %v3060_v9 }
  0xca   :  { %v87_v5 = vpop.f32.mrf.mxu0  ;;  %v163_v6 = vpop.f32.mrf.mxu1 }
  0xcb   :  { %92 = vst.msk [vmem:[#allocation2] sm:$0x1] %vm91_vm2, %v87_v5  ;;  %167 = vst.msk [vmem:[#allocation2 + $0x1] sm:$0x1] %vm91_vm2, %v163_v6 }
  0xcc   :  { %v2636_v7 = vpop.f32.mrf.mxu0  ;;  %v2647_v8 = vpop.f32.mrf.mxu1 }
  0xd4   :  { %v238_v10 = vpop.f32.mrf.mxu0  ;;  %v313_v11 = vpop.f32.mrf.mxu1 }
  0xd5   :  { %242 = vst.msk [vmem:[#allocation2 + $0x2] sm:$0x1] %vm91_vm2, %v238_v10  ;;  %317 = vst.msk [vmem:[#allocation2 + $0x3] sm:$0x1] %vm91_vm2, %v313_v11 }
  0xd6   :  { %v2658_v2 = vpop.f32.mrf.mxu0  ;;  %v2669_v12 = vpop.f32.mrf.mxu1 }
  0xde   :  { %v388_v13 = vpop.f32.mrf.mxu0  ;;  %v463_v14 = vpop.f32.mrf.mxu1 }
  0xdf   :  { %392 = vst.msk [vmem:[#allocation2 + $0x4] sm:$0x1] %vm91_vm2, %v388_v13  ;;  %467 = vst.msk [vmem:[#allocation2 + $0x5] sm:$0x1] %vm91_vm2, %v463_v14 }
  0xe0   :  { %v2680_v9 = vpop.f32.mrf.mxu0  ;;  %v2691_v15 = vpop.f32.mrf.mxu1 }
  0xe8   :  { %v538_v16 = vpop.f32.mrf.mxu0  ;;  %v613_v17 = vpop.f32.mrf.mxu1 }
  0xe9   :  { %542 = vst.msk [vmem:[#allocation2 + $0x6] sm:$0x1] %vm91_vm2, %v538_v16  ;;  %617 = vst.msk [vmem:[#allocation2 + $0x7] sm:$0x1] %vm91_vm2, %v613_v17 }
  0xea   :  { %v2702_v18 = vpop.f32.mrf.mxu0  ;;  %v2713_v19 = vpop.f32.mrf.mxu1 }
  0xf2   :  { %v688_v20 = vpop.f32.mrf.mxu0  ;;  %v763_v21 = vpop.f32.mrf.mxu1 }
  0xf3   :  { %692 = vst.msk [vmem:[#allocation2 + $0x8] sm:$0x1] %vm91_vm2, %v688_v20  ;;  %767 = vst.msk [vmem:[#allocation2 + $0x9] sm:$0x1] %vm91_vm2, %v763_v21 }
  0xf4   :  { %v2724_v22 = vpop.f32.mrf.mxu0  ;;  %v2735_v23 = vpop.f32.mrf.mxu1 }
  0xfc   :  { %v838_v24 = vpop.f32.mrf.mxu0  ;;  %v913_v25 = vpop.f32.mrf.mxu1 }
  0xfd   :  { %842 = vst.msk [vmem:[#allocation2 + $0xa] sm:$0x1] %vm91_vm2, %v838_v24  ;;  %917 = vst.msk [vmem:[#allocation2 + $0xb] sm:$0x1] %vm91_vm2, %v913_v25 }
  0xfe   :  { %v2746_v26 = vpop.f32.mrf.mxu0  ;;  %v2757_v27 = vpop.f32.mrf.mxu1 }
 0x106   :  { %v988_v28 = vpop.f32.mrf.mxu0  ;;  %v1063_v29 = vpop.f32.mrf.mxu1 }
 0x107   :  { %992 = vst.msk [vmem:[#allocation2 + $0xc] sm:$0x1] %vm91_vm2, %v988_v28  ;;  %1067 = vst.msk [vmem:[#allocation2 + $0xd] sm:$0x1] %vm91_vm2, %v1063_v29 }
 0x108   :  { %v2768_v30 = vpop.f32.mrf.mxu0  ;;  %v2779_v31 = vpop.f32.mrf.mxu1 }
 0x110   :  { %v1138_v32 = vpop.f32.mrf.mxu0  ;;  %v1213_v33 = vpop.f32.mrf.mxu1 }
 0x111   :  { %1142 = vst.msk [vmem:[#allocation2 + $0xe] sm:$0x1] %vm91_vm2, %v1138_v32  ;;  %1217 = vst.msk [vmem:[#allocation2 + $0xf] sm:$0x1] %vm91_vm2, %v1213_v33 }
 0x112   :  { %v2790_v34 = vpop.f32.mrf.mxu0  ;;  %v2801_v35 = vpop.f32.mrf.mxu1 }
 0x11a   :  { %v1288_v36 = vpop.f32.mrf.mxu0  ;;  %v1363_v37 = vpop.f32.mrf.mxu1 }
 0x11b   :  { %1292 = vst.msk [vmem:[#allocation2 + $0x10] sm:$0x1] %vm91_vm2, %v1288_v36  ;;  %1367 = vst.msk [vmem:[#allocation2 + $0x11] sm:$0x1] %vm91_vm2, %v1363_v37 }
 0x11c   :  { %v2812_v38 = vpop.f32.mrf.mxu0  ;;  %v2823_v39 = vpop.f32.mrf.mxu1 }
 0x124   :  { %v1438_v40 = vpop.f32.mrf.mxu0  ;;  %v1513_v41 = vpop.f32.mrf.mxu1 }
 0x125   :  { %1442 = vst.msk [vmem:[#allocation2 + $0x12] sm:$0x1] %vm91_vm2, %v1438_v40  ;;  %1517 = vst.msk [vmem:[#allocation2 + $0x13] sm:$0x1] %vm91_vm2, %v1513_v41 }
 0x126   :  { %v2834_v42 = vpop.f32.mrf.mxu0  ;;  %v2845_v43 = vpop.f32.mrf.mxu1 }
 0x12e   :  { %v1588_v44 = vpop.f32.mrf.mxu0  ;;  %v1663_v45 = vpop.f32.mrf.mxu1 }
 0x12f   :  { %1592 = vst.msk [vmem:[#allocation2 + $0x14] sm:$0x1] %vm91_vm2, %v1588_v44  ;;  %1667 = vst.msk [vmem:[#allocation2 + $0x15] sm:$0x1] %vm91_vm2, %v1663_v45 }
 0x130   :  { %v2856_v46 = vpop.f32.mrf.mxu0  ;;  %v2867_v47 = vpop.f32.mrf.mxu1 }
 0x138   :  { %v1738_v48 = vpop.f32.mrf.mxu0  ;;  %v1813_v49 = vpop.f32.mrf.mxu1 }
 0x139   :  { %1742 = vst.msk [vmem:[#allocation2 + $0x16] sm:$0x1] %vm91_vm2, %v1738_v48  ;;  %1817 = vst.msk [vmem:[#allocation2 + $0x17] sm:$0x1] %vm91_vm2, %v1813_v49 }
 0x13a   :  { %v2878_v50 = vpop.f32.mrf.mxu0  ;;  %v2889_v51 = vpop.f32.mrf.mxu1 }
 0x142   :  { %v1888_v52 = vpop.f32.mrf.mxu0  ;;  %v1963_v53 = vpop.f32.mrf.mxu1 }
 0x143   :  { %1892 = vst.msk [vmem:[#allocation2 + $0x18] sm:$0x1] %vm91_vm2, %v1888_v52  ;;  %1967 = vst.msk [vmem:[#allocation2 + $0x19] sm:$0x1] %vm91_vm2, %v1963_v53 }
 0x144   :  { %v2900_v54 = vpop.f32.mrf.mxu0  ;;  %v2911_v55 = vpop.f32.mrf.mxu1 }
 0x14c   :  { %v2038_v56 = vpop.f32.mrf.mxu0  ;;  %v2113_v57 = vpop.f32.mrf.mxu1 }
 0x14d   :  { %2042 = vst.msk [vmem:[#allocation2 + $0x1a] sm:$0x1] %vm91_vm2, %v2038_v56  ;;  %2117 = vst.msk [vmem:[#allocation2 + $0x1b] sm:$0x1] %vm91_vm2, %v2113_v57 }
 0x14e   :  { %v2922_v58 = vpop.f32.mrf.mxu0  ;;  %v2933_v59 = vpop.f32.mrf.mxu1 }
 0x156   :  { %v2188_v60 = vpop.f32.mrf.mxu0  ;;  %v2263_v61 = vpop.f32.mrf.mxu1 }
 0x157   :  { %2192 = vst.msk [vmem:[#allocation2 + $0x1c] sm:$0x1] %vm91_vm2, %v2188_v60  ;;  %2267 = vst.msk [vmem:[#allocation2 + $0x1d] sm:$0x1] %vm91_vm2, %v2263_v61 }
 0x158   :  { %v2944_v62 = vpop.f32.mrf.mxu0  ;;  %v2955_v63 = vpop.f32.mrf.mxu1 }
 0x160   :  { %v2338_v0 = vpop.f32.mrf.mxu0  ;;  %v2413_v1 = vpop.f32.mrf.mxu1 }
 0x161   :  { %2342 = vst.msk [vmem:[#allocation2 + $0x1e] sm:$0x1] %vm91_vm2, %v2338_v0  ;;  %2417 = vst.msk [vmem:[#allocation2 + $0x1f] sm:$0x1] %vm91_vm2, %v2413_v1 }
 0x162   :  { %v2966_v3 = vpop.f32.mrf.mxu0  ;;  %v2977_v4 = vpop.f32.mrf.mxu1 }
 0x163   :  { %2994 = shalt.err (!%p2991_p4)
}
 0x164   :  { %s3008_s8 = smov 128   ;;  %s3009_s9 = smov 8  }
 0x165   :  { %2429 = dma.vmem_to_hbm [thread:$0]  %s2424_s6, 512, %s3707_s2, [#allocation3], %s3008_s8, %s3008_s8, %s3009_s9  }
 0x166   :  { %3003 = dma.done.wait [#allocation3], 512  }
 0x167   :  { %3004 = vsyncadd [#allocation3], 4294966784 }
 0x168   :  { %2433 = vsyncpa [#allocation3], 1 }

</bundles_post_ra>
